<compile_context>
chip_gen: v6e
topology: v6e:2x2x1
jax: 0.10.0
libtpu: 0.0.40
codegen_flags: <defaults>
</compile_context>

<pallas_src>
import functools

import jax
import jax.numpy as jnp
from jax.experimental import pallas as pl
from jax.experimental.pallas import tpu as pltpu


def _round_up(x: int, m: int) -> int:
    return ((x + m - 1) // m) * m


def _int_pow(x, n: int):
    """x**n for integer n >= 1 via repeated squaring (pure VPU, no EUP)."""
    result = None
    base = x
    while n:
        if n & 1:
            result = base if result is None else result * base
        n >>= 1
        if n:
            base = base * base
    return result


def _focal_kernel(logits_ref, targets_ref, alpha_ref, partial_ref,
                  *, gamma, smooth_ratio, v, total_b):
    block_b, nc = logits_ref.shape
    logits = logits_ref[...].astype(jnp.float32)      # upcast in-kernel (bf16 ok)
    t = targets_ref[...]                              # (block_b, 1) int32
    alpha = alpha_ref[...].astype(jnp.float32)        # (1, nc)

    # --- row-stable softmax; one reciprocal + one log per ROW (not per elem) ---
    m = jnp.max(logits, axis=1, keepdims=True)
    shifted = logits - m
    e = jnp.exp(shifted)
    denom = jnp.sum(e, axis=1, keepdims=True)          # (block_b, 1)
    inv_denom = pl.reciprocal(denom, approx=True)      # EUP, per-row only
    prob = e * inv_denom                               # VPU multiply
    logprob = shifted - jnp.log(denom)                 # exact log path

    # --- focal modulation: integer gamma -> multiply chain on the VPU ---
    one_m_prob = jnp.maximum(1.0 - prob, 0.0)          # clamp (approx recip => p may exceed 1)
    if float(gamma) == float(int(gamma)) and int(gamma) >= 1:
        focal = _int_pow(one_m_prob, int(gamma))
    elif float(gamma) == 0.0:
        focal = jnp.ones_like(one_m_prob)
    else:
        focal = one_m_prob ** gamma                    # transcendental fallback (non-integer gamma)

    # --- fused, UN-normalized smoothed/alpha-weighted one-hot * focal * CE ---
    col = jax.lax.broadcasted_iota(jnp.int32, (block_b, nc), 1)
    weight = alpha * jnp.where(col == t,
                               jnp.float32(1.0 - smooth_ratio + v),
                               jnp.float32(v))
    contrib = weight * focal * (-logprob)

    # mask out rows that are batch padding
    row = (jax.lax.broadcasted_iota(jnp.int32, (block_b, 1), 0)
           + pl.program_id(0) * block_b)
    contrib = jnp.where(row < total_b, contrib, 0.0)

    partial_ref[0, 0] = jnp.sum(contrib)


def label_smooth_focal_loss(logits, targets, alpha, *, gamma, smooth_ratio, v,
                            block_b=512):
    """logits: (B, NC) float32/bf16; targets: (B,) int; alpha: (1, NC) float32."""
    b, nc = logits.shape
    targets = targets.astype(jnp.int32)
    alpha_row = alpha.reshape(1, nc).astype(jnp.float32)

    # Closed-form normalizer: sum over the whole batch of alpha * smoothed one-hot.
    # (Replaces the in-kernel global `one_hot / one_hot.sum()`.)
    norm = (jnp.float32(v) * b * jnp.sum(alpha_row)
            + jnp.float32(1.0 - smooth_ratio) * jnp.sum(alpha_row[0, targets]))

    # Batch tiling: block_b rows per grid step (multiple of 8 sublanes).
    block_b = max(8, min(int(block_b), _round_up(b, 8)))
    block_b = _round_up(block_b, 8)
    padded_b = _round_up(b, block_b)
    num_blocks = padded_b // block_b

    pad = padded_b - b
    logits_p = jnp.pad(logits, ((0, pad), (0, 0))) if pad else logits
    targets_p = jnp.pad(targets, (0, pad)) if pad else targets
    targets_col = targets_p.reshape(padded_b, 1)

    kernel = functools.partial(_focal_kernel, gamma=gamma,
                               smooth_ratio=smooth_ratio, v=v, total_b=b)

    partials = pl.pallas_call(
        kernel,
        out_shape=jax.ShapeDtypeStruct((num_blocks, 1), jnp.float32),
        grid=(num_blocks,),
        in_specs=[
            pl.BlockSpec((block_b, nc), lambda i: (i, 0)),   # logits tile
            pl.BlockSpec((block_b, 1), lambda i: (i, 0)),    # targets column tile
            pl.BlockSpec((1, nc), lambda i: (0, 0)),         # alpha row (pinned)
        ],
        out_specs=pl.BlockSpec((1, 1), lambda i: (i, 0),
                               memory_space=pltpu.MemorySpace.SMEM),
        compiler_params=pltpu.CompilerParams(
            dimension_semantics=("parallel",)),
    )(logits_p, targets_col, alpha_row)

    # Tiny final reduction + single scalar divide in the wrapper.
    return jnp.sum(partials) / norm


def make_params(num_classes, alpha_list, smoothing=True):
    """Deterministic parameter setup mirroring LabelSmoothFocalLoss.__init__."""
    alpha = jnp.asarray(alpha_list, dtype=jnp.float32).reshape(1, -1)
    assert alpha.size == num_classes
    alpha = alpha / jnp.sum(alpha)
    smooth_ratio = min(0.08, num_classes * 0.004) if smoothing else 0.0
    v = smooth_ratio / num_classes
    return alpha, float(smooth_ratio), float(v)


if __name__ == "__main__":
    B, NC = 4, 3
    gamma = 2

    alpha, smooth_ratio, v = make_params(NC, [1, 5, 1], smoothing=True)

    key = jax.random.PRNGKey(0)
    k_logits, k_tgt = jax.random.split(key)
    logits = jax.random.uniform(k_logits, (B, NC), dtype=jnp.float32)
    targets = jax.random.randint(k_tgt, (B,), 0, NC, dtype=jnp.int32)

    loss = label_smooth_focal_loss(
        logits, targets, alpha, gamma=gamma, smooth_ratio=smooth_ratio, v=v)
    jax.block_until_ready(loss)

    # pure-JAX reference check (same math as the PyTorch forward)
    prob = jax.nn.softmax(logits, axis=1)
    focal = (1.0 - prob) ** gamma
    one_hot = jnp.full((B, NC), v, dtype=jnp.float32)
    one_hot = one_hot.at[jnp.arange(B), targets].set(1.0 - smooth_ratio + v)
    one_hot = alpha * one_hot
    one_hot = one_hot / jnp.sum(one_hot)
    ref = jnp.sum(focal * (-(one_hot * jnp.log(prob))))

    # Tolerance accounts for the approximate EUP reciprocal in the softmax
    # (relative error O(1e-4) on prob, well below 2e-3 on the final scalar).
    assert jnp.allclose(loss, ref, rtol=2e-3, atol=2e-3), (loss, ref)
    print("KERNEL_OK")
</pallas_src>

<mosaic_0001>
module attributes {stable_mosaic.version = 11 : i64} {
  func.func @_focal_kernel(%arg0: i32, %arg1: memref<8x3xf32, #tpu.memory_space<vmem>>, %arg2: memref<8x1xi32, #tpu.memory_space<vmem>>, %arg3: memref<1x3xf32, #tpu.memory_space<vmem>>, %arg4: memref<1x1xf32, #tpu.memory_space<smem>>) attributes {dimension_semantics = [#tpu.dimension_semantics<parallel>], iteration_bounds = array<i64: 1>, scalar_prefetch = 0 : i64, scratch_operands = 0 : i64, tpu.core_type = #tpu.core_type<tc>, window_params = [{transform_indices = @transform_0, window_bounds = array<i64: 8, 3>}, {transform_indices = @transform_1, window_bounds = array<i64: 8, 1>}, {pipeline_mode = #tpu.pipeline_mode<synchronous>, transform_indices = @transform_2, window_bounds = array<i64: 1, 3>}, {transform_indices = @transform_3, window_bounds = array<i64: 1, 1>}]} {
    %c0 = arith.constant 0 : index
    %c0_0 = arith.constant 0 : index
    %0 = vector.load %arg1[%c0, %c0_0] : memref<8x3xf32, #tpu.memory_space<vmem>>, vector<8x3xf32>
    %c0_1 = arith.constant 0 : index
    %c0_2 = arith.constant 0 : index
    %1 = vector.load %arg2[%c0_1, %c0_2] : memref<8x1xi32, #tpu.memory_space<vmem>>, vector<8x1xi32>
    %c0_3 = arith.constant 0 : index
    %c0_4 = arith.constant 0 : index
    %2 = vector.load %arg3[%c0_3, %c0_4] : memref<1x3xf32, #tpu.memory_space<vmem>>, vector<1x3xf32>
    %cst = arith.constant dense<0xFF800000> : vector<8xf32>
    %3 = vector.multi_reduction <maximumf>, %0, %cst [1] : vector<8x3xf32> to vector<8xf32>
    %4 = vector.shape_cast %3 : vector<8xf32> to vector<8x1xf32>
    %5 = vector.broadcast %4 : vector<8x1xf32> to vector<8x3xf32>
    %6 = arith.subf %0, %5 : vector<8x3xf32>
    %7 = math.exp %6 : vector<8x3xf32>
    %cst_5 = arith.constant dense<0.000000e+00> : vector<8xf32>
    %8 = vector.multi_reduction <add>, %7, %cst_5 [1] : vector<8x3xf32> to vector<8xf32>
    %9 = vector.shape_cast %8 : vector<8xf32> to vector<8x1xf32>
    %10 = tpu.reciprocal %9 {approx = true} : vector<8x1xf32> -> vector<8x1xf32>
    %11 = vector.broadcast %10 : vector<8x1xf32> to vector<8x3xf32>
    %12 = arith.mulf %7, %11 : vector<8x3xf32>
    %13 = math.log %9 : vector<8x1xf32>
    %14 = vector.broadcast %13 : vector<8x1xf32> to vector<8x3xf32>
    %15 = arith.subf %6, %14 : vector<8x3xf32>
    %cst_6 = arith.constant 1.000000e+00 : f32
    %16 = vector.broadcast %cst_6 : f32 to vector<8x3xf32>
    %17 = arith.subf %16, %12 : vector<8x3xf32>
    %cst_7 = arith.constant 0.000000e+00 : f32
    %18 = vector.broadcast %cst_7 : f32 to vector<8x3xf32>
    %19 = arith.maximumf %17, %18 : vector<8x3xf32>
    %20 = arith.mulf %19, %19 : vector<8x3xf32>
    %21 = tpu.iota {dimensions = array<i32: 1>} : vector<8x3xi32>
    %22 = vector.broadcast %1 : vector<8x1xi32> to vector<8x3xi32>
    %23 = arith.cmpi eq, %21, %22 : vector<8x3xi32>
    %cst_8 = arith.constant 0.991999983 : f32
    %cst_9 = arith.constant 4.000000e-03 : f32
    %24 = vector.broadcast %cst_8 : f32 to vector<8x3xf32>
    %25 = vector.broadcast %cst_9 : f32 to vector<8x3xf32>
    %26 = arith.select %23, %24, %25 : vector<8x3xi1>, vector<8x3xf32>
    %27 = vector.broadcast %2 : vector<1x3xf32> to vector<8x3xf32>
    %28 = arith.mulf %27, %26 : vector<8x3xf32>
    %29 = arith.mulf %28, %20 : vector<8x3xf32>
    %cst_10 = arith.constant 0.000000e+00 : f32
    %30 = vector.broadcast %cst_10 : f32 to vector<8x3xf32>
    %31 = arith.subf %30, %15 : vector<8x3xf32>
    %32 = arith.mulf %29, %31 : vector<8x3xf32>
    %33 = tpu.iota {dimensions = array<i32: 0>} : vector<8x1xi32>
    %c8_i32 = arith.constant 8 : i32
    %34 = arith.muli %arg0, %c8_i32 : i32
    %35 = vector.broadcast %34 : i32 to vector<8x1xi32>
    %36 = arith.addi %33, %35 : vector<8x1xi32>
    %c4_i32 = arith.constant 4 : i32
    %37 = vector.broadcast %c4_i32 : i32 to vector<8x1xi32>
    %38 = arith.cmpi slt, %36, %37 : vector<8x1xi32>
    %cst_11 = arith.constant 0.000000e+00 : f32
    %39 = vector.shape_cast %38 : vector<8x1xi1> to vector<8x1xi1>
    %40 = vector.broadcast %39 : vector<8x1xi1> to vector<8x3xi1>
    %41 = vector.broadcast %cst_11 : f32 to vector<8x3xf32>
    %42 = arith.select %40, %32, %41 : vector<8x3xi1>, vector<8x3xf32>
    %43 = vector.shape_cast %42 : vector<8x3xf32> to vector<1x8x3xf32>
    %cst_12 = arith.constant dense<0.000000e+00> : vector<1xf32>
    %44 = vector.multi_reduction <add>, %43, %cst_12 [1, 2] : vector<1x8x3xf32> to vector<1xf32>
    %45 = vector.shape_cast %44 : vector<1xf32> to vector<1x1x1xf32>
    %46 = vector.extract %45[0, 0, 0] : f32 from vector<1x1x1xf32>
    %c0_13 = arith.constant 0 : index
    %c0_14 = arith.constant 0 : index
    %47 = memref.load %arg4[%c0_13, %c0_14] : memref<1x1xf32, #tpu.memory_space<smem>>
    memref.store %46, %arg4[%c0_13, %c0_14] : memref<1x1xf32, #tpu.memory_space<smem>>
    return
  }
  func.func @transform_0(%arg0: i32) -> (i32, i32) {
    %c0_i32 = arith.constant 0 : i32
    %c0_i32_0 = arith.constant 0 : i32
    return %arg0, %c0_i32 : i32, i32
  }
  func.func @transform_1(%arg0: i32) -> (i32, i32) {
    %c0_i32 = arith.constant 0 : i32
    %c0_i32_0 = arith.constant 0 : i32
    return %arg0, %c0_i32 : i32, i32
  }
  func.func @transform_2(%arg0: i32) -> (i32, i32) {
    %c0_i32 = arith.constant 0 : i32
    %c0_i32_0 = arith.constant 0 : i32
    %c0_i32_1 = arith.constant 0 : i32
    return %c0_i32, %c0_i32_0 : i32, i32
  }
  func.func @transform_3(%arg0: i32) -> (i32, i32) {
    %c0_i32 = arith.constant 0 : i32
    %c0_i32_0 = arith.constant 0 : i32
    return %arg0, %c0_i32 : i32, i32
  }
}

</mosaic_0001>

<bundles_post_ra>
// kernel: tpu_custom_call.1
= control target key start
LH: loop header
LB: loop body
LE: loop exit
PB: predicated region body
PF: predicated region fallthrough
CT: control target
= control target key end

     0   :  { %vm18_vm0 = vcmask 23552   ;;  %s149_s0 = inlined_call_operand.vmem [shape: f32[8,3], index: 0, kind: input, shape index: {}]   ;;  %s150_s1 = inlined_call_operand.vmem [shape: s32[8,1], index: 1, kind: input, shape index: {}]   ;;  %s151_s2 = inlined_call_operand.vmem [shape: f32[1,3], index: 2, kind: input, shape index: {}]   ;;  %s152_s3 = inlined_call_operand.hbm [shape: f32[1,1], index: 3, kind: output, shape index: {}]  }
   0x1   :  { %v15_v0 = vld [vmem:[%s149_s0] sm:$0xff] }
   0x2   :  { %8 = vsyncpa [#allocation3], 0  ;;  %v19_v1 = vsel %vm18_vm0, %v15_v0, -inf  ;;  %v16_v2 = vld [vmem:[%s150_s1] sm:$0xff]  ;;  %v111_v3 = vmov 0   ;;  %v36_v10 = vlaneseq  ;;  %s113_s16 = smov [#allocation2]  }
   0x3   :  { %20 = vmax.xlane.f32.xlu0 %v19_v1  ;;  %93 = vset.pattern.permute.xlu1 %v111_v3  ;;  %v87_v17 = vld [vmem:[%s151_s2] ss:$0 sm:$0xff]  ;;  %v112_v18 = vmov 0.004  }
   0x4   :  { %94 = vset.pattern.permute.xlu0 %v111_v3  ;;  %39 = vperm.xlu1 %93, %v16_v2   ;;  %v37_v11 = vand.u32 127, %v36_v10  ;;  %v54_v24 = vshrl.u32 %v36_v10, 7 }
   0x6   :  { %vm58_vm2 = vcmp.lt.s32.totalorder %v54_v24, 4 }
  0x7f   :  { %v40_v12 = vpop.permute.xlu1 %39 }
  0x80   :  { %vm41_vm1 = vcmp.eq.s32.totalorder %v37_v11, %v40_v12 }
  0x81   :  { %v42_v19 = vsel %vm41_vm1, 0.992, %v112_v18 }
  0x82   :  { %v49_v22 = vmul.f32 %v87_v17, %v42_v19 }
  0x8c   :  { %v21_v4 = vpop.xlane.xlu0 %20 }
  0x8d   :  { %v22_v5 = vsub.f32 %v15_v0, %v21_v4 }
  0x8f   :  { %v23_v6 = vmul.f32 1.442695, %v22_v5 }
  0x91   :  { %95 = vpow2.f32 %v23_v6 }
  0x9e   :  { %v96_v7 = vpop.eup %95 }
  0x9f   :  { %v25_v8 = vsel %vm18_vm0, %v96_v7, 0.0 }
  0xa0   :  { %26 = vadd.xlane.f32.xlu0 %v25_v8 }
 0x129   :  { %v27_v9 = vpop.xlane.xlu0 %26 }
 0x12a   :  { %97 = vrcp.f32 %v27_v9 }
 0x12b   :  { %99 = vlog2.f32 %v27_v9 }
 0x137   :  { %v98_v13 = vpop.eup %97 }
 0x138   :  { %v100_v14 = vpop.eup %99  ;;  %v29_v15 = vmul.f32 %v98_v13, %v96_v7 }
 0x139   :  { %v31_v16 = vmul.f32 0.6931472, %v100_v14 }
 0x13a   :  { %v33_v20 = vsub.f32 1.0, %v29_v15 }
 0x13b   :  { %v32_v23 = vsub.f32 %v22_v5, %v31_v16 }
 0x13c   :  { %v34_v21 = vmax.f32 %v33_v20, 0.0 }
 0x13d   :  { %v51_v27 = vsub.f32 0.0, %v32_v23 }
 0x13e   :  { %v35_v25 = vmul.f32 %v34_v21, %v34_v21 }
 0x140   :  { %v50_v26 = vmul.f32 %v49_v22, %v35_v25 }
 0x142   :  { %v52_v28 = vmul.f32 %v51_v27, %v50_v26 }
 0x144   :  { %v61_v29 = vsel %vm58_vm2, %v52_v28, 0.0 }
 0x145   :  { %v62_v30 = vsel %vm18_vm0, %v61_v29, 0.0 }
 0x146   :  { %63 = vadd.xlane.f32.xlu1 %v62_v30 }
 0x1cf   :  { %v64_v31 = vpop.xlane.xlu1 %63 }
 0x1d0   :  { %v65_v32 = vrot.slane %v64_v31, 4 }
 0x1d2   :  { %v66_v33 = vadd.f32 %v65_v32, %v64_v31 }
 0x1d4   :  { %v67_v34 = vrot.slane %v66_v33, 2 }
 0x1d6   :  { %v68_v35 = vadd.f32 %v67_v34, %v66_v33 }
 0x1d8   :  { %v69_v36 = vrot.slane %v68_v35, 1 }
 0x1da   :  { %v70_v37 = vadd.f32 %v69_v36, %v68_v35 }
 0x1dc   :  { %88 = vpush %v70_v37 }
 0x20d   :  { %s89_s2 = spop %88 }
 0x20e   :  { %73 = sst [smem:[#allocation2]] %s89_s2 }
 0x20f   :  { %81 = dma.smem_to_hbm %s113_s16, 16, %s152_s3, [#allocation3]  }
 0x210   :  { %109 = dma.done.wait [#allocation3], 16  }
 0x211   :  { %110 = vsyncadd [#allocation3], 4294967280 }
 0x212   :  { %85 = sfence }
 0x213   :  { %86 = vsyncpa [#allocation3], 1 }

</bundles_post_ra>
